<compile_context>
chip_gen: v5e
topology: v5e:2x2
jax: 0.10.0
libtpu: 0.0.40
codegen_flags: <defaults>
</compile_context>

<pallas_src>
import functools

import jax
import jax.numpy as jnp
from jax.experimental import pallas as pl
from jax.experimental.pallas import tpu as pltpu


# ----------------------------------------------------------------------------
# Kernel
# ----------------------------------------------------------------------------

def _geglu_kernel(x_ref, wk_ref, bk_ref, wv_ref, bv_ref, wo_ref, bo_ref,
                  o_ref, acc_ref):
    h_idx = pl.program_id(1)

    @pl.when(h_idx == 0)
    def _():
        acc_ref[...] = jnp.zeros_like(acc_ref)

    x = x_ref[...]                                  # (bm, C) bf16

    # Up-projection tiles (bf16 MXU, f32 accumulation), bias add in f32.
    k = jnp.dot(x, wk_ref[...], preferred_element_type=jnp.float32) + bk_ref[...]
    v = jnp.dot(x, wv_ref[...], preferred_element_type=jnp.float32) + bv_ref[...]

    # Exact (erf-based) GELU gate in f32 -- matches PyTorch F.gelu default.
    # TODO(synk): switch to tanh-approx (EUP) GELU if exactness can be relaxed.
    g = 0.5 * k * (1.0 + jax.lax.erf(k * jnp.float32(0.7071067811865476)))
    hgate = (g * v).astype(wo_ref.dtype)            # back to bf16 for the MXU

    # Partial down-projection for this hidden tile, accumulated in f32.
    acc_ref[...] += jnp.dot(hgate, wo_ref[...], preferred_element_type=jnp.float32)

    @pl.when(h_idx == pl.num_programs(1) - 1)
    def _():
        o_ref[...] = (acc_ref[...] + bo_ref[...]).astype(o_ref.dtype)


# ----------------------------------------------------------------------------
# Wrapper
# ----------------------------------------------------------------------------

def _round_up(x, m):
    return (x + m - 1) // m * m


def _pick_hidden_tile(hp, max_tile):
    """Largest multiple of 128 that divides hp and is <= max_tile."""
    t = min(max_tile, hp)
    t -= t % 128
    while t > 128 and hp % t != 0:
        t -= 128
    return max(t, 128)


def _pick_row_block(rows, block_rows):
    if rows <= 8:
        return rows                                  # full-dim block is legal
    bm = min(block_rows, _round_up(rows, 8))
    if pl.cdiv(rows, bm) < 2:                        # give megacore >= 2 programs
        bm = max(8, _round_up(pl.cdiv(rows, 2), 8))
    return bm


def _pad2(a, r, c):
    return jnp.pad(a, ((0, r - a.shape[0]), (0, c - a.shape[1])))


def geglu(x, wk, bk, wv, bv, wo, bo, *, block_rows=512, block_hidden=512):
    """x: [B, T, C]; wk/wv: [C, H]; wo: [H, C]; biases 1-D. Returns [B, T, C]."""
    B, T, C = x.shape
    H = wk.shape[1]
    rows = B * T

    # Lane-aligned padded sizes.
    Hp = _round_up(H, 128)
    Ht = _pick_hidden_tile(Hp, block_hidden)
    Cp = C if C % 128 == 0 else _round_up(C, 128)

    # Row tiling.
    bm = _pick_row_block(rows, block_rows)
    n_row = pl.cdiv(rows, bm)
    n_h = Hp // Ht

    cdt = jnp.bfloat16  # MXU operand dtype (f32 accumulation inside the kernel)

    x2 = x.reshape(rows, C).astype(cdt)
    wk_p = _pad2(wk, C, Hp).astype(cdt)                       # [C, Hp]
    wv_p = _pad2(wv, C, Hp).astype(cdt)                       # [C, Hp]
    wo_p = _pad2(wo, Hp, Cp).astype(cdt)                      # [Hp, Cp]
    bk_p = _pad2(bk.reshape(1, H), 1, Hp).astype(jnp.float32)  # [1, Hp]
    bv_p = _pad2(bv.reshape(1, H), 1, Hp).astype(jnp.float32)  # [1, Hp]
    bo_p = _pad2(bo.reshape(1, C), 1, Cp).astype(jnp.float32)  # [1, Cp]

    y = pl.pallas_call(
        _geglu_kernel,
        out_shape=jax.ShapeDtypeStruct((rows, Cp), x.dtype),
        grid=(n_row, n_h),
        in_specs=[
            pl.BlockSpec((bm, C), lambda i, h: (i, 0)),       # x rows (resident over h)
            pl.BlockSpec((C, Ht), lambda i, h: (0, h)),       # Wk column tile
            pl.BlockSpec((1, Ht), lambda i, h: (0, h)),       # bk tile
            pl.BlockSpec((C, Ht), lambda i, h: (0, h)),       # Wv column tile
            pl.BlockSpec((1, Ht), lambda i, h: (0, h)),       # bv tile
            pl.BlockSpec((Ht, Cp), lambda i, h: (h, 0)),      # Wo row tile
            pl.BlockSpec((1, Cp), lambda i, h: (0, 0)),       # bo
        ],
        out_specs=pl.BlockSpec((bm, Cp), lambda i, h: (i, 0)),
        scratch_shapes=[pltpu.VMEM((bm, Cp), jnp.float32)],   # f32 accumulator
        compiler_params=pltpu.CompilerParams(
            dimension_semantics=("parallel", "arbitrary"),
            vmem_limit_bytes=48 * 1024 * 1024,
        ),
    )(x2, wk_p, bk_p, wv_p, bv_p, wo_p, bo_p)

    return y[:, :C].reshape(B, T, C)


# ----------------------------------------------------------------------------
# Pure-JAX reference (exact-GELU GeGLU, f32)
# ----------------------------------------------------------------------------

def geglu_ref(x, wk, bk, wv, bv, wo, bo):
    k = x @ wk + bk
    v = x @ wv + bv
    g = 0.5 * k * (1.0 + jax.lax.erf(k * 0.7071067811865476))
    return (g * v) @ wo + bo


if __name__ == "__main__":
    # Config implied by the module: n_embd=32, n_ffn=32 -> hidden_sz = 3*32 = 96.
    B, T, C = 2, 8, 32
    H = 3 * 32

    key = jax.random.PRNGKey(0)
    kx, k1, k2, k3, k4, k5, k6 = jax.random.split(key, 7)

    x = jax.random.normal(kx, (B, T, C), jnp.float32)
    wk = 0.02 * jax.random.normal(k1, (C, H), jnp.float32)
    bk = 0.02 * jax.random.normal(k2, (H,), jnp.float32)
    wv = 0.02 * jax.random.normal(k3, (C, H), jnp.float32)
    bv = 0.02 * jax.random.normal(k4, (H,), jnp.float32)
    wo = 0.02 * jax.random.normal(k5, (H, C), jnp.float32)
    bo = 0.02 * jax.random.normal(k6, (C,), jnp.float32)

    y = jax.jit(geglu)(x, wk, bk, wv, bv, wo, bo)
    jax.block_until_ready(y)
    assert y.shape == (B, T, C)

    # bf16 matmul operands -> looser tolerance vs. the f32 reference.
    y_ref = geglu_ref(x, wk, bk, wv, bv, wo, bo)
    assert jnp.allclose(y, y_ref, rtol=2e-2, atol=2e-3), (
        float(jnp.max(jnp.abs(y - y_ref))))

    print("KERNEL_OK")
</pallas_src>

<mosaic_0001>
module attributes {stable_mosaic.version = 11 : i64} {
  func.func @_geglu_kernel(%arg0: i32, %arg1: i32, %arg2: memref<8x32xbf16, #tpu.memory_space<vmem>>, %arg3: memref<32x128xbf16, #tpu.memory_space<vmem>>, %arg4: memref<1x128xf32, #tpu.memory_space<vmem>>, %arg5: memref<32x128xbf16, #tpu.memory_space<vmem>>, %arg6: memref<1x128xf32, #tpu.memory_space<vmem>>, %arg7: memref<128x128xbf16, #tpu.memory_space<vmem>>, %arg8: memref<1x128xf32, #tpu.memory_space<vmem>>, %arg9: memref<8x128xf32, #tpu.memory_space<vmem>>, %arg10: memref<8x128xf32, #tpu.memory_space<vmem>>) attributes {dimension_semantics = [#tpu.dimension_semantics<parallel>, #tpu.dimension_semantics<arbitrary>], iteration_bounds = array<i64: 2, 1>, scalar_prefetch = 0 : i64, scratch_operands = 1 : i64, tpu.core_type = #tpu.core_type<tc>, window_params = [{transform_indices = @transform_0, window_bounds = array<i64: 8, 32>}, {transform_indices = @transform_1, window_bounds = array<i64: 32, 128>}, {transform_indices = @transform_2, window_bounds = array<i64: 1, 128>}, {transform_indices = @transform_3, window_bounds = array<i64: 32, 128>}, {transform_indices = @transform_4, window_bounds = array<i64: 1, 128>}, {transform_indices = @transform_5, window_bounds = array<i64: 128, 128>}, {pipeline_mode = #tpu.pipeline_mode<synchronous>, transform_indices = @transform_6, window_bounds = array<i64: 1, 128>}, {transform_indices = @transform_7, window_bounds = array<i64: 8, 128>}]} {
    %c0_i32 = arith.constant 0 : i32
    %0 = arith.cmpi eq, %arg1, %c0_i32 : i32
    %1 = arith.extui %0 : i1 to i32
    %c0_i32_0 = arith.constant 0 : i32
    %2 = arith.cmpi ne, %1, %c0_i32_0 : i32
    scf.if %2 {
      %cst_23 = arith.constant 0.000000e+00 : f32
      %32 = vector.broadcast %cst_23 : f32 to vector<8x128xf32>
      %c0_24 = arith.constant 0 : index
      %c0_25 = arith.constant 0 : index
      %33 = vector.load %arg10[%c0_24, %c0_25] : memref<8x128xf32, #tpu.memory_space<vmem>>, vector<8x128xf32>
      tpu.vector_store %arg10[%c0_24, %c0_25], %32 {strides = array<i32>} : memref<8x128xf32, #tpu.memory_space<vmem>>, vector<8x128xf32>,
    } else {
    }
    %c0 = arith.constant 0 : index
    %c0_1 = arith.constant 0 : index
    %3 = vector.load %arg2[%c0, %c0_1] : memref<8x32xbf16, #tpu.memory_space<vmem>>, vector<8x32xbf16>
    %c0_2 = arith.constant 0 : index
    %c0_3 = arith.constant 0 : index
    %4 = vector.load %arg3[%c0_2, %c0_3] : memref<32x128xbf16, #tpu.memory_space<vmem>>, vector<32x128xbf16>
    %cst = arith.constant dense<0.000000e+00> : vector<8x128xf32>
    %5 = tpu.matmul %3, %4, %cst {dimension_numbers = #tpu.dot_dimension_numbers<[1], [0], [0], [1], [0, 0, 1, 1], [], []>} : vector<8x32xbf16>, vector<32x128xbf16>, vector<8x128xf32> -> vector<8x128xf32>
    %c0_4 = arith.constant 0 : index
    %c0_5 = arith.constant 0 : index
    %6 = vector.load %arg4[%c0_4, %c0_5] : memref<1x128xf32, #tpu.memory_space<vmem>>, vector<1x128xf32>
    %7 = vector.broadcast %6 : vector<1x128xf32> to vector<8x128xf32>
    %8 = arith.addf %5, %7 : vector<8x128xf32>
    %c0_6 = arith.constant 0 : index
    %c0_7 = arith.constant 0 : index
    %9 = vector.load %arg5[%c0_6, %c0_7] : memref<32x128xbf16, #tpu.memory_space<vmem>>, vector<32x128xbf16>
    %cst_8 = arith.constant dense<0.000000e+00> : vector<8x128xf32>
    %10 = tpu.matmul %3, %9, %cst_8 {dimension_numbers = #tpu.dot_dimension_numbers<[1], [0], [0], [1], [0, 0, 1, 1], [], []>} : vector<8x32xbf16>, vector<32x128xbf16>, vector<8x128xf32> -> vector<8x128xf32>
    %c0_9 = arith.constant 0 : index
    %c0_10 = arith.constant 0 : index
    %11 = vector.load %arg6[%c0_9, %c0_10] : memref<1x128xf32, #tpu.memory_space<vmem>>, vector<1x128xf32>
    %12 = vector.broadcast %11 : vector<1x128xf32> to vector<8x128xf32>
    %13 = arith.addf %10, %12 : vector<8x128xf32>
    %cst_11 = arith.constant 5.000000e-01 : f32
    %14 = vector.broadcast %cst_11 : f32 to vector<8x128xf32>
    %15 = arith.mulf %14, %8 : vector<8x128xf32>
    %cst_12 = arith.constant 0.707106769 : f32
    %16 = vector.broadcast %cst_12 : f32 to vector<8x128xf32>
    %17 = arith.mulf %8, %16 : vector<8x128xf32>
    %18 = math.erf %17 : vector<8x128xf32>
    %cst_13 = arith.constant 1.000000e+00 : f32
    %19 = vector.broadcast %cst_13 : f32 to vector<8x128xf32>
    %20 = arith.addf %19, %18 : vector<8x128xf32>
    %21 = arith.mulf %15, %20 : vector<8x128xf32>
    %22 = arith.mulf %21, %13 : vector<8x128xf32>
    %23 = arith.truncf %22 : vector<8x128xf32> to vector<8x128xbf16>
    %c0_14 = arith.constant 0 : index
    %c0_15 = arith.constant 0 : index
    %24 = vector.load %arg10[%c0_14, %c0_15] : memref<8x128xf32, #tpu.memory_space<vmem>>, vector<8x128xf32>
    %c0_16 = arith.constant 0 : index
    %c0_17 = arith.constant 0 : index
    %25 = vector.load %arg7[%c0_16, %c0_17] : memref<128x128xbf16, #tpu.memory_space<vmem>>, vector<128x128xbf16>
    %cst_18 = arith.constant dense<0.000000e+00> : vector<8x128xf32>
    %26 = tpu.matmul %23, %25, %cst_18 {dimension_numbers = #tpu.dot_dimension_numbers<[1], [0], [0], [1], [0, 0, 1, 1], [], []>} : vector<8x128xbf16>, vector<128x128xbf16>, vector<8x128xf32> -> vector<8x128xf32>
    %27 = arith.addf %24, %26 : vector<8x128xf32>
    %c0_19 = arith.constant 0 : index
    %c0_20 = arith.constant 0 : index
    %28 = vector.load %arg10[%c0_19, %c0_20] : memref<8x128xf32, #tpu.memory_space<vmem>>, vector<8x128xf32>
    tpu.vector_store %arg10[%c0_19, %c0_20], %27 {strides = array<i32>} : memref<8x128xf32, #tpu.memory_space<vmem>>, vector<8x128xf32>,
    %c0_i32_21 = arith.constant 0 : i32
    %29 = arith.cmpi eq, %arg1, %c0_i32_21 : i32
    %30 = arith.extui %29 : i1 to i32
    %c0_i32_22 = arith.constant 0 : i32
    %31 = arith.cmpi ne, %30, %c0_i32_22 : i32
    scf.if %31 {
      %c0_23 = arith.constant 0 : index
      %c0_24 = arith.constant 0 : index
      %32 = vector.load %arg10[%c0_23, %c0_24] : memref<8x128xf32, #tpu.memory_space<vmem>>, vector<8x128xf32>
      %c0_25 = arith.constant 0 : index
      %c0_26 = arith.constant 0 : index
      %33 = vector.load %arg8[%c0_25, %c0_26] : memref<1x128xf32, #tpu.memory_space<vmem>>, vector<1x128xf32>
      %34 = vector.broadcast %33 : vector<1x128xf32> to vector<8x128xf32>
      %35 = arith.addf %32, %34 : vector<8x128xf32>
      %c0_27 = arith.constant 0 : index
      %c0_28 = arith.constant 0 : index
      %36 = vector.load %arg9[%c0_27, %c0_28] : memref<8x128xf32, #tpu.memory_space<vmem>>, vector<8x128xf32>
      tpu.vector_store %arg9[%c0_27, %c0_28], %35 {strides = array<i32>} : memref<8x128xf32, #tpu.memory_space<vmem>>, vector<8x128xf32>,
    } else {
    }
    return
  }
  func.func @transform_0(%arg0: i32, %arg1: i32) -> (i32, i32) {
    %c0_i32 = arith.constant 0 : i32
    %c0_i32_0 = arith.constant 0 : i32
    return %arg0, %c0_i32 : i32, i32
  }
  func.func @transform_1(%arg0: i32, %arg1: i32) -> (i32, i32) {
    %c0_i32 = arith.constant 0 : i32
    %c0_i32_0 = arith.constant 0 : i32
    return %c0_i32, %arg1 : i32, i32
  }
  func.func @transform_2(%arg0: i32, %arg1: i32) -> (i32, i32) {
    %c0_i32 = arith.constant 0 : i32
    %c0_i32_0 = arith.constant 0 : i32
    return %c0_i32, %arg1 : i32, i32
  }
  func.func @transform_3(%arg0: i32, %arg1: i32) -> (i32, i32) {
    %c0_i32 = arith.constant 0 : i32
    %c0_i32_0 = arith.constant 0 : i32
    return %c0_i32, %arg1 : i32, i32
  }
  func.func @transform_4(%arg0: i32, %arg1: i32) -> (i32, i32) {
    %c0_i32 = arith.constant 0 : i32
    %c0_i32_0 = arith.constant 0 : i32
    return %c0_i32, %arg1 : i32, i32
  }
  func.func @transform_5(%arg0: i32, %arg1: i32) -> (i32, i32) {
    %c0_i32 = arith.constant 0 : i32
    %c0_i32_0 = arith.constant 0 : i32
    return %arg1, %c0_i32 : i32, i32
  }
  func.func @transform_6(%arg0: i32, %arg1: i32) -> (i32, i32) {
    %c0_i32 = arith.constant 0 : i32
    %c0_i32_0 = arith.constant 0 : i32
    %c0_i32_1 = arith.constant 0 : i32
    return %c0_i32, %c0_i32_0 : i32, i32
  }
  func.func @transform_7(%arg0: i32, %arg1: i32) -> (i32, i32) {
    %c0_i32 = arith.constant 0 : i32
    %c0_i32_0 = arith.constant 0 : i32
    return %arg0, %c0_i32 : i32, i32
  }
}

</mosaic_0001>

<bundles_post_ra>
// kernel: geglu.1
= control target key start
LH: loop header
LB: loop body
LE: loop exit
PB: predicated region body
PF: predicated region fallthrough
CT: control target
= control target key end

     0   :  { %s884_s24 = smov 0   ;;  %s886_s25 = smov 0   ;;  %s966_s0 = inlined_call_operand.vmem [shape: bf16[16,32], index: 0, kind: input, shape index: {}]   ;;  %s967_s1 = inlined_call_operand.vmem [shape: bf16[32,128], index: 1, kind: input, shape index: {}]   ;;  %s968_s2 = inlined_call_operand.vmem [shape: f32[1,128], index: 2, kind: input, shape index: {}]   ;;  %s969_s3 = inlined_call_operand.vmem [shape: bf16[32,128], index: 3, kind: input, shape index: {}]   ;;  %s970_s4 = inlined_call_operand.vmem [shape: f32[1,128], index: 4, kind: input, shape index: {}]   ;;  %s971_s5 = inlined_call_operand.vmem [shape: bf16[128,128], index: 5, kind: input, shape index: {}]   ;;  %s972_s6 = inlined_call_operand.vmem [shape: f32[1,128], index: 6, kind: input, shape index: {}]   ;;  %s973_s7 = inlined_call_operand.vmem [shape: f32[16,128], index: 7, kind: output, shape index: {}]  }
   0x1   :  { %s888_s26 = smov 0  }
   0x2 LB: > { %s29_s27 = sadd.s32 1, %s838_s25  ;;  %p723_p0 = scmp.ge.s32.totalorder %s842_s26, 1  ;;  %s842_s26 = sphi %s888_s26, %s17_s26   ;;  %s838_s25 = sphi %s886_s25, %s975_s25   ;;  %s834_s24 = sphi %s884_s24, %s974_s24  }
   0x3   : > { %p31_p1 = scmp.ge.s32.totalorder %s29_s27, 2  ;;  %p293_p2 = scmp.lt.s32.totalorder %s842_s26, 3 }
   0x5   : > { %s977_s27 = smov (%p31_p1, %s29_s27), 0  ;;  %p294_p3 = pnand %p723_p0, %p293_p2 }
   0x6   : > { %p342_p4 = scmp.lt.s32.totalorder (!%p294_p3), %s834_s24, 1 }
   0x7   : > { %297 = sbr.rel (%p294_p3) target bundleno = 343 (0x157), region = 48 }
   0xc   : > { %v780_v0 = vld [vmem:[%s967_s1 + $0x8] sm:$0xff]  ;;  %v779_v2 = vld [vmem:[%s967_s1] sm:$0xff]  ;;  %s979_s24 = smov (!%p342_p4, %s834_s24), 1  ;;  %vm397_vm0 = vcmask 261120   ;;  %v790_v5 = vld [vmem:[%s971_s5 + $0x38] sm:$0xff] }
   0xd   : > { %v782_v1 = vld [vmem:[%s969_s3 + $0x8] sm:$0xff]  ;;  %407 = vmatpush.bf16.msra.mxu0 %v780_v0  ;;  %v781_v3 = vld [vmem:[%s969_s3] sm:$0xff]  ;;  %s724_s13 = sshll.u32 %s979_s24, 2  ;;  %558 = vmatpush.bf16.msra.mxu2 %v790_v5  ;;  %v789_v7 = vld [vmem:[%s971_s5 + $0x30] sm:$0xff]  ;;  %s725_s18 = sshll.u32 %s979_s24, 3 }
   0xe   : > { %440 = vmatpush.bf16.msra.mxu1 %v782_v1  ;;  %s345_s16 = scalar_lea.vmem %s966_s0, %s724_s13  ;;  %v815_v6 = vld [vmem:[%s968_s2] ss:$0 sm:$0xff]  ;;  %v788_v10 = vld [vmem:[%s971_s5 + $0x28] sm:$0xff]  ;;  %v786_v18 = vld [vmem:[%s971_s5 + $0x18] sm:$0xff]  ;;  %s369_s23 = scalar_lea.vmem %s973_s7, %s725_s18 }
   0xf   : > { %v376_v4 = vld [vmem:[%s345_s16] sm:$0xf]  ;;  %v785_v24 = vld [vmem:[%s971_s5 + $0x10] sm:$0xff]  ;;  %v784_v27 = vld [vmem:[%s971_s5 + $0x8] sm:$0xff] }
  0x10   : > { %v787_v13 = vld [vmem:[%s971_s5 + $0x20] sm:$0xff] }
  0x11   : > { %408 = vmatpush.bf16.msra.mxu0 %v779_v2  ;;  %559 = vmatpush.bf16.msra.mxu2 %v789_v7  ;;  %v783_v32 = vld [vmem:[%s971_s5] sm:$0xff] }
  0x12   : > { %441 = vmatpush.bf16.msra.mxu1 %v781_v3  ;;  %v816_v54 = vld [vmem:[%s970_s4] ss:$0 sm:$0xff] }
  0x13   : > { %v817_v62 = vld [vmem:[%s972_s6] ss:$0 sm:$0xff] }
  0x14   : > { %734 = vmatmul.msk.bf16.vlgmr.msra.gmra.mxu0 %vm397_vm0, %v376_v4 }
  0x15   : > { %743 = vmatmul.msk.bf16.vlgmr.msra.gmra.mxu1 %vm397_vm0, %v376_v4  ;;  %560 = vmatpush.bf16.msra.mxu2 %v788_v10 }
  0x19   : > { %561 = vmatpush.bf16.msra.mxu2 %v787_v13 }
  0x1d   : > { %562 = vmatpush.bf16.msra.mxu2 %v786_v18 }
  0x21   : > { %563 = vmatpush.bf16.msra.mxu2 %v785_v24 }
  0x25   : > { %564 = vmatpush.bf16.msra.mxu2 %v784_v27 }
  0x29   : > { %565 = vmatpush.bf16.msra.mxu2 %v783_v32 }
  0x91   : > { %v410_v8 = vpop.f32.mrf.mxu0 }
  0x92   : > { %v411_v9 = vadd.f32 %v815_v6, %v410_v8  ;;  %v443_v21 = vpop.f32.mrf.mxu1 }
  0x93   : > { %v444_v57 = vadd.f32 %v816_v54, %v443_v21 }
  0x94   : > { %v448_v11 = vmul.f32 0.70710677, %v411_v9  ;;  %v447_v56 = vmul.f32 0.5, %v411_v9 }
  0x96   : > { %v449_v12 = vmul.f32 %v448_v11, %v448_v11 }
  0x98   : > { %v450_v14 = vmin.f32 %v449_v12, 16.0 }
  0x99   : > { %v412_v15 = vpop.f32.mrf.mxu0 }
  0x9a   : > { %v451_v16 = vmul.f32 2.1237322e-06, %v450_v14  ;;  %v462_v17 = vmul.f32 3.8918573e-05, %v450_v14  ;;  %v445_v31 = vpop.f32.mrf.mxu1 }
  0x9c   : > { %v452_v19 = vadd.f32 0.00028619796, %v451_v16  ;;  %v463_v20 = vadd.f32 0.001143296, %v462_v17 }
  0x9e   : > { %v453_v22 = vmul.f32 %v452_v19, %v450_v14  ;;  %v464_v23 = vmul.f32 %v463_v20, %v450_v14 }
  0xa0   : > { %v465_v25 = vadd.f32 0.014752088, %v464_v23  ;;  %v454_v26 = vadd.f32 0.0036580483, %v453_v22 }
  0xa2   : > { %v466_v28 = vmul.f32 %v465_v25, %v450_v14  ;;  %v455_v30 = vmul.f32 %v454_v26, %v450_v14 }
  0xa4   : > { %v467_v29 = vadd.f32 0.112945676, %v466_v28  ;;  %v456_v35 = vadd.f32 0.05243302, %v455_v30 }
  0xa6   : > { %v468_v33 = vmul.f32 %v467_v29, %v450_v14  ;;  %v457_v38 = vmul.f32 %v456_v35, %v450_v14 }
  0xa8   : > { %v469_v34 = vadd.f32 0.4994258, %v468_v33  ;;  %v458_v39 = vadd.f32 0.18741608, %v457_v38 }
  0xaa   : > { %v470_v36 = vmul.f32 %v469_v34, %v450_v14  ;;  %v459_v41 = vmul.f32 %v458_v39, %v450_v14 }
  0xac   : > { %v471_v37 = vadd.f32 1.0, %v470_v36  ;;  %v460_v45 = vadd.f32 1.1283791, %v459_v41 }
  0xae   : > { %818 = vrcp.f32 %v471_v37  ;;  %v483_v44 = vand.u32 2147483648, %v471_v37  ;;  %v481_v47 = vand.u32 2147483647, %v471_v37  ;;  %vm477_vm2 = vweird.f32 %v471_v37 }
  0xaf   : > { %v461_v50 = vmul.f32 %v460_v45, %v448_v11 }
  0xb0   : > { %v484_v49 = vor.u32 1.1754944e-38, %v483_v44  ;;  %vm482_vm4 = vcmp.eq.f32.partialorder %v481_v47, 8.507059e+37 }
  0xb4   : > { %v819_v40 = vpop.eup %818 }
  0xb5   : > { %v473_v42 = vmul.f32 %v819_v40, %v471_v37  ;;  %vm478_vm1 = vweird.f32 %v819_v40 }
  0xb6   : > { %vm479_vm3 = vmor %vm477_vm2, %vm478_vm1 }
  0xb7   : > { %v474_v43 = vsub.f32 1.0, %v473_v42 }
  0xb9   : > { %v475_v46 = vmul.f32 %v819_v40, %v474_v43 }
  0xbb   : > { %v476_v48 = vadd.f32 %v819_v40, %v475_v46 }
  0xbd   : > { %v480_v51 = vsel %vm479_vm3, %v819_v40, %v476_v48 }
  0xbe   : > { %v485_v52 = vsel %vm482_vm4, %v484_v49, %v480_v51 }
  0xbf   : > { %v486_v53 = vmul.f32 %v485_v52, %v461_v50 }
  0xc1   : > { %v744_v55 = vclamps-f32 %v486_v53, 1.0 }
  0xc3   : > { %v489_v58 = vadd.f32 1.0, %v744_v55 }
  0xc5   : > { %v490_v59 = vmul.f32 %v489_v58, %v447_v56 }
  0xc7   : > { %v491_v60 = vmul.f32 %v490_v59, %v444_v57 }
  0xc9   : > { %v492_v61 = vpack.c.bf16 %v491_v60, %v491_v60 }
  0xcb   : > { %566 = vmatmul.bf16.vlgmr.msra.gmra.mxu2 %v492_v61 }
 0x14e   : > { %v567_v63 = vpop.f32.mrf.mxu2 }
 0x14f   : > { %v581_v0 = vadd.f32 %v817_v62, %v567_v63 }
 0x151   : > { %582 = vst [vmem:[%s369_s23] sm:$0xff] %v581_v0 }
 0x156   : > { %v569_v1 = vpop.f32.mrf.mxu2 }
 0x157 PF: > { %s17_s26 = sadd.s32 1, %s842_s26   ;;  %s974_s24 = smov %s838_s25 }
 0x158   : > { %p14_p5 = scmp.ge.s32.totalorder %s17_s26, 4   ;;  %s975_s25 = smov %s977_s27 }
 0x15a   :  { %16 = sbr.rel (!%p14_p5) target bundleno = 2 (0x2), region = 101 }

</bundles_post_ra>
